<compile_context>
chip_gen: v7x
topology: tpu7x:2x2x1
jax: 0.10.0
libtpu: 0.0.40
codegen_flags: <defaults>
</compile_context>

<pallas_src>
import functools

import numpy as np
import jax
import jax.numpy as jnp
from jax import lax
from jax.experimental import pallas as pl
from jax.experimental.pallas import tpu as pltpu

# small shapes consistent with the module
T, B, D, H, BLOCK = 8, 2, 16, 32, 4
DROP_KEEP = 1.0  # test_flag=True, gru_drop=0.0 -> drop_mask == 1.0 (elided in-kernel)


def block_indx(k, rc, cc):
    """numpy port of BCMGRU.block_indx (block-circulant index matrix)."""
    rc = int((rc + k - 1) // k) * k
    cc = int((cc + k - 1) // k) * k
    i = np.arange(0, k, 1).reshape([1, k])
    j = np.arange(0, -k, -1).reshape([k, 1])
    indx = (i + j + k) % k
    m = np.tile(indx, [int(rc // k), int(cc // k)])
    offset = np.arange(0, rc * cc)
    ii = offset // cc // k
    jj = offset % cc // k
    offset = (ii * cc + jj * k).reshape([rc, cc])
    return m + offset


def bcmgru_layer_kernel(x_ref, wih_ref, whh_ref, bias_ref, o_ref, xw_ref, *,
                        t_steps, batch):
    # x_ref:    (T*B, D)   f32  (one utterance, leading grid dim squeezed)
    # wih_ref:  (D, 3H)    f32
    # whh_ref:  (H, 3H)    f32
    # bias_ref: (1, 3H)    f32
    # o_ref:    (T*B, H)   f32  (lane/sublane-dense output slab)
    # xw_ref:   (T*B, 3H)  f32  VMEM scratch: hoisted input projection
    Hn = o_ref.shape[-1]

    # In-kernel bf16 casts of the MXU operands (f32 stays the wire dtype).
    whh = whh_ref[...].astype(jnp.bfloat16)

    # Hoisted, time-independent input projection: one (T*B,D)@(D,3H) matmul,
    # written once to VMEM scratch. Equivalent to the pre-computed
    # F.linear(x, weight_ih, bias_ih) in the PyTorch module (batchnorm off).
    xw_ref[...] = jnp.dot(x_ref[...].astype(jnp.bfloat16),
                          wih_ref[...].astype(jnp.bfloat16),
                          preferred_element_type=jnp.float32) + bias_ref[...]

    # Peeled k=0 step: h_init == 0, so h@W_hh == 0 and the reset gate is moot.
    wk0 = xw_ref[pl.ds(0, batch), :]
    z0 = jax.nn.sigmoid(wk0[:, Hn:2 * Hn])
    ht = (1.0 - z0) * jnp.tanh(wk0[:, :Hn])
    o_ref[pl.ds(0, batch), :] = ht

    for k in range(1, t_steps):  # fully unrolled: t_steps is a compile-time const
        # recurrent projection F.linear(ht, weight_hh, None)
        u = jnp.dot(ht.astype(jnp.bfloat16), whh,
                    preferred_element_type=jnp.float32)            # (B, 3H)
        wk = xw_ref[pl.ds(k * batch, batch), :]                    # (B, 3H) static slice
        # fused z/r gates: one sigmoid over the 2H-wide (z, r) block, f32 math
        zr = jax.nn.sigmoid(wk[:, Hn:] + u[:, Hn:])
        zt, rt = zr[:, :Hn], zr[:, Hn:]
        hcand = jnp.tanh(wk[:, :Hn] + u[:, :Hn] * rt)              # act='tanh'; drop==1
        ht = hcand + zt * (ht - hcand)                             # == zt*ht + (1-zt)*hcand
        o_ref[pl.ds(k * batch, batch), :] = ht                     # static per-step store


def _bcmgru_forward(xs, w_ih, w_hh, bias):
    """xs: (N, T, B, D) f32 -> (N, T, B, H) f32; N independent utterances
    mapped onto a leading 'parallel' grid axis (weights stay VMEM-resident)."""
    N_, T_, B_, D_ = xs.shape
    H_ = w_hh.shape[0]
    x2d = xs.reshape(N_, T_ * B_, D_)  # contiguous reshape: metadata only
    kernel = functools.partial(bcmgru_layer_kernel, t_steps=T_, batch=B_)
    out = pl.pallas_call(
        kernel,
        out_shape=jax.ShapeDtypeStruct((N_, T_ * B_, H_), jnp.float32),
        grid=(N_,),
        in_specs=[
            pl.BlockSpec((None, T_ * B_, D_), lambda n: (n, 0, 0)),
            pl.BlockSpec((D_, 3 * H_), lambda n: (0, 0)),   # constant index_map ->
            pl.BlockSpec((H_, 3 * H_), lambda n: (0, 0)),   #   weights VMEM-resident
            pl.BlockSpec((1, 3 * H_), lambda n: (0, 0)),
        ],
        out_specs=pl.BlockSpec((None, T_ * B_, H_), lambda n: (n, 0, 0)),
        scratch_shapes=[pltpu.VMEM((T_ * B_, 3 * H_), jnp.float32)],
        compiler_params=pltpu.CompilerParams(
            dimension_semantics=("parallel",)),
    )(x2d, w_ih, w_hh, bias)
    return out.reshape(N_, T_, B_, H_)


bcmgru_layer_batched = jax.jit(_bcmgru_forward)


@jax.jit
def bcmgru_layer(x, w_ih, w_hh, bias):
    """x: (T, B, D) f32 -> (T, B, H) f32 hidden states (single GRU layer)."""
    return _bcmgru_forward(x[None], w_ih, w_hh, bias)[0]


def make_params(key):
    """Deterministic block-circulant parameter construction (BCMGRU.__init__)."""
    kih, khh = jax.random.split(key, 2)
    target_c_ih = D * 3 * H // BLOCK   # 16*96/4 = 384
    target_c_hh = H * 3 * H // BLOCK   # 32*96/4 = 768
    vector_ih = 0.1 * jax.random.normal(kih, (target_c_ih,), jnp.float32)
    vector_hh = 0.1 * jax.random.normal(khh, (target_c_hh,), jnp.float32)

    indx_ih = (block_indx(BLOCK, D, 3 * H) + target_c_ih) % target_c_ih
    indx_ih = indx_ih[:D, :3 * H]
    indx_hh = (block_indx(BLOCK, H, 3 * H) + target_c_hh) % target_c_hh
    indx_hh = indx_hh[:H, :3 * H]

    # weight_ih = vector_ih[indx_ih].view(D, 3H).t();
    # F.linear(x, weight_ih, b) == x @ vector_ih[indx_ih].view(D, 3H) + b
    w_ih = vector_ih[jnp.asarray(indx_ih.reshape(-1))].reshape(D, 3 * H)
    w_hh = vector_hh[jnp.asarray(indx_hh.reshape(-1))].reshape(H, 3 * H)
    bias_ih = jnp.full((1, 3 * H), 0.1, jnp.float32)  # bias_ih.data.fill_(0.1)
    return w_ih, w_hh, bias_ih


def ref_forward(x, w_ih, w_hh, bias, matmul_dtype=jnp.float32):
    """Pure-JAX reference of the same recurrence.

    matmul_dtype=f32 reproduces the exact PyTorch f32 math; bf16 reproduces the
    kernel's bf16-operand / f32-accumulate matmuls for a tight check.
    """
    Hl = w_hh.shape[0]
    Bl = x.shape[1]
    xm = x.astype(matmul_dtype)
    wih = w_ih.astype(matmul_dtype)
    whh = w_hh.astype(matmul_dtype)

    def step(ht, xk):
        wk = jnp.dot(xk, wih, preferred_element_type=jnp.float32) + bias[0]
        u = jnp.dot(ht.astype(matmul_dtype), whh,
                    preferred_element_type=jnp.float32)
        wh, wz, wr = wk[:, :Hl], wk[:, Hl:2 * Hl], wk[:, 2 * Hl:]
        uh, uz, ur = u[:, :Hl], u[:, Hl:2 * Hl], u[:, 2 * Hl:]
        zt = jax.nn.sigmoid(wz + uz)
        rt = jax.nn.sigmoid(wr + ur)
        hcand = jnp.tanh(wh + uh * rt) * DROP_KEEP
        ht = zt * ht + (1.0 - zt) * hcand
        return ht, ht

    _, hs = lax.scan(step, jnp.zeros((Bl, Hl), jnp.float32), xm)
    return hs


if __name__ == "__main__":
    key = jax.random.PRNGKey(0)
    kx, kp = jax.random.split(key)
    x = jax.random.normal(kx, (T, B, D), jnp.float32)
    w_ih, w_hh, bias_ih = make_params(kp)

    out = jax.block_until_ready(bcmgru_layer(x, w_ih, w_hh, bias_ih))
    assert out.shape == (T, B, H)

    # tight regression check vs a reference that uses the same bf16 matmul operands
    ref_bf16 = ref_forward(x, w_ih, w_hh, bias_ih, matmul_dtype=jnp.bfloat16)
    err_bf16 = float(jnp.max(jnp.abs(out - ref_bf16)))
    assert err_bf16 < 1e-3, f"mismatch vs bf16-matmul reference, max abs err = {err_bf16}"

    # looser sanity check vs the exact-f32 PyTorch-equivalent math
    ref_f32 = ref_forward(x, w_ih, w_hh, bias_ih, matmul_dtype=jnp.float32)
    err_f32 = float(jnp.max(jnp.abs(out - ref_f32)))
    assert err_f32 < 5e-2, f"mismatch vs f32 reference, max abs err = {err_f32}"

    # batched path: 2 independent utterances on the 'parallel' grid axis
    x2 = jax.random.normal(jax.random.PRNGKey(1), (T, B, D), jnp.float32)
    xs = jnp.stack([x, x2], axis=0)
    outs = jax.block_until_ready(bcmgru_layer_batched(xs, w_ih, w_hh, bias_ih))
    assert outs.shape == (2, T, B, H)
    err_same = float(jnp.max(jnp.abs(outs[0] - out)))
    assert err_same < 1e-5, f"batched[0] != single-call output, max abs err = {err_same}"
    ref2 = ref_forward(x2, w_ih, w_hh, bias_ih, matmul_dtype=jnp.bfloat16)
    err2 = float(jnp.max(jnp.abs(outs[1] - ref2)))
    assert err2 < 1e-3, f"batched[1] mismatch vs bf16 reference, max abs err = {err2}"

    # TODO(synk): bidir / layernorm / batchnorm / train-mode bernoulli-dropout
    # branches are disabled by the chosen options and not implemented in-kernel.
    print("KERNEL_OK")
</pallas_src>

<mosaic_0001>
module attributes {stable_mosaic.version = 11 : i64} {
  func.func @bcmgru_layer_kernel(%arg0: i32, %arg1: memref<1x16x16xf32, #tpu.memory_space<vmem>>, %arg2: memref<16x96xf32, #tpu.memory_space<vmem>>, %arg3: memref<32x96xf32, #tpu.memory_space<vmem>>, %arg4: memref<1x96xf32, #tpu.memory_space<vmem>>, %arg5: memref<1x16x32xf32, #tpu.memory_space<vmem>>, %arg6: memref<16x96xf32, #tpu.memory_space<vmem>>) attributes {dimension_semantics = [#tpu.dimension_semantics<parallel>], iteration_bounds = array<i64: 1>, scalar_prefetch = 0 : i64, scratch_operands = 1 : i64, tpu.core_type = #tpu.core_type<tc>, window_params = [{transform_indices = @transform_0, window_bounds = array<i64: 1, 16, 16>}, {pipeline_mode = #tpu.pipeline_mode<synchronous>, transform_indices = @transform_1, window_bounds = array<i64: 16, 96>}, {pipeline_mode = #tpu.pipeline_mode<synchronous>, transform_indices = @transform_2, window_bounds = array<i64: 32, 96>}, {pipeline_mode = #tpu.pipeline_mode<synchronous>, transform_indices = @transform_3, window_bounds = array<i64: 1, 96>}, {transform_indices = @transform_4, window_bounds = array<i64: 1, 16, 32>}]} {
    %c0 = arith.constant 0 : index
    %c0_0 = arith.constant 0 : index
    %0 = vector.load %arg3[%c0, %c0_0] : memref<32x96xf32, #tpu.memory_space<vmem>>, vector<32x96xf32>
    %1 = arith.truncf %0 : vector<32x96xf32> to vector<32x96xbf16>
    %c0_1 = arith.constant 0 : index
    %c0_2 = arith.constant 0 : index
    %c0_3 = arith.constant 0 : index
    %2 = vector.load %arg1[%c0_1, %c0_2, %c0_3] : memref<1x16x16xf32, #tpu.memory_space<vmem>>, vector<1x16x16xf32>
    %3 = vector.shape_cast %2 : vector<1x16x16xf32> to vector<16x16xf32>
    %4 = arith.truncf %3 : vector<16x16xf32> to vector<16x16xbf16>
    %c0_4 = arith.constant 0 : index
    %c0_5 = arith.constant 0 : index
    %5 = vector.load %arg2[%c0_4, %c0_5] : memref<16x96xf32, #tpu.memory_space<vmem>>, vector<16x96xf32>
    %6 = arith.truncf %5 : vector<16x96xf32> to vector<16x96xbf16>
    %cst = arith.constant dense<0.000000e+00> : vector<16x96xf32>
    %7 = tpu.matmul %4, %6, %cst {dimension_numbers = #tpu.dot_dimension_numbers<[1], [0], [0], [1], [0, 0, 1, 1], [], []>} : vector<16x16xbf16>, vector<16x96xbf16>, vector<16x96xf32> -> vector<16x96xf32>
    %c0_6 = arith.constant 0 : index
    %c0_7 = arith.constant 0 : index
    %8 = vector.load %arg4[%c0_6, %c0_7] : memref<1x96xf32, #tpu.memory_space<vmem>>, vector<1x96xf32>
    %9 = vector.broadcast %8 : vector<1x96xf32> to vector<16x96xf32>
    %10 = arith.addf %7, %9 : vector<16x96xf32>
    %c0_8 = arith.constant 0 : index
    %c0_9 = arith.constant 0 : index
    %11 = vector.load %arg6[%c0_8, %c0_9] : memref<16x96xf32, #tpu.memory_space<vmem>>, vector<16x96xf32>
    tpu.vector_store %arg6[%c0_8, %c0_9], %10 {strides = array<i32>} : memref<16x96xf32, #tpu.memory_space<vmem>>, vector<16x96xf32>,
    %c0_10 = arith.constant 0 : index
    %c0_11 = arith.constant 0 : index
    %12 = vector.load %arg6[%c0_10, %c0_11] : memref<16x96xf32, #tpu.memory_space<vmem>>, vector<2x96xf32>
    %13 = vector.extract_strided_slice %12 {offsets = [0, 32], sizes = [2, 32], strides = [1, 1]} : vector<2x96xf32> to vector<2x32xf32>
    %14 = arith.negf %13 : vector<2x32xf32>
    %15 = math.exp %14 : vector<2x32xf32>
    %cst_12 = arith.constant 1.000000e+00 : f32
    %16 = vector.broadcast %cst_12 : f32 to vector<2x32xf32>
    %17 = arith.addf %16, %15 : vector<2x32xf32>
    %18 = arith.divf %16, %17 : vector<2x32xf32>
    %cst_13 = arith.constant 1.000000e+00 : f32
    %19 = vector.broadcast %cst_13 : f32 to vector<2x32xf32>
    %20 = arith.subf %19, %18 : vector<2x32xf32>
    %21 = vector.extract_strided_slice %12 {offsets = [0, 0], sizes = [2, 32], strides = [1, 1]} : vector<2x96xf32> to vector<2x32xf32>
    %22 = math.tanh %21 : vector<2x32xf32>
    %23 = arith.mulf %20, %22 : vector<2x32xf32>
    %c0_14 = arith.constant 0 : index
    %c0_15 = arith.constant 0 : index
    %c0_16 = arith.constant 0 : index
    %24 = vector.load %arg5[%c0_14, %c0_15, %c0_16] : memref<1x16x32xf32, #tpu.memory_space<vmem>>, vector<1x2x32xf32>
    %25 = vector.shape_cast %24 : vector<1x2x32xf32> to vector<2x32xf32>
    %26 = vector.shape_cast %23 : vector<2x32xf32> to vector<1x2x32xf32>
    tpu.vector_store %arg5[%c0_14, %c0_15, %c0_16], %26 {strides = array<i32>} : memref<1x16x32xf32, #tpu.memory_space<vmem>>, vector<1x2x32xf32>,
    %27 = arith.truncf %23 : vector<2x32xf32> to vector<2x32xbf16>
    %cst_17 = arith.constant dense<0.000000e+00> : vector<2x96xf32>
    %28 = tpu.matmul %27, %1, %cst_17 {dimension_numbers = #tpu.dot_dimension_numbers<[1], [0], [0], [1], [0, 0, 1, 1], [], []>} : vector<2x32xbf16>, vector<32x96xbf16>, vector<2x96xf32> -> vector<2x96xf32>
    %c2 = arith.constant 2 : index
    %c0_18 = arith.constant 0 : index
    %29 = vector.load %arg6[%c2, %c0_18] : memref<16x96xf32, #tpu.memory_space<vmem>>, vector<2x96xf32>
    %30 = vector.extract_strided_slice %29 {offsets = [0, 32], sizes = [2, 64], strides = [1, 1]} : vector<2x96xf32> to vector<2x64xf32>
    %31 = vector.extract_strided_slice %28 {offsets = [0, 32], sizes = [2, 64], strides = [1, 1]} : vector<2x96xf32> to vector<2x64xf32>
    %32 = arith.addf %30, %31 : vector<2x64xf32>
    %33 = arith.negf %32 : vector<2x64xf32>
    %34 = math.exp %33 : vector<2x64xf32>
    %cst_19 = arith.constant 1.000000e+00 : f32
    %35 = vector.broadcast %cst_19 : f32 to vector<2x64xf32>
    %36 = arith.addf %35, %34 : vector<2x64xf32>
    %37 = arith.divf %35, %36 : vector<2x64xf32>
    %38 = vector.extract_strided_slice %37 {offsets = [0, 0], sizes = [2, 32], strides = [1, 1]} : vector<2x64xf32> to vector<2x32xf32>
    %39 = vector.extract_strided_slice %37 {offsets = [0, 32], sizes = [2, 32], strides = [1, 1]} : vector<2x64xf32> to vector<2x32xf32>
    %40 = vector.extract_strided_slice %29 {offsets = [0, 0], sizes = [2, 32], strides = [1, 1]} : vector<2x96xf32> to vector<2x32xf32>
    %41 = vector.extract_strided_slice %28 {offsets = [0, 0], sizes = [2, 32], strides = [1, 1]} : vector<2x96xf32> to vector<2x32xf32>
    %42 = arith.mulf %41, %39 : vector<2x32xf32>
    %43 = arith.addf %40, %42 : vector<2x32xf32>
    %44 = math.tanh %43 : vector<2x32xf32>
    %45 = arith.subf %23, %44 : vector<2x32xf32>
    %46 = arith.mulf %38, %45 : vector<2x32xf32>
    %47 = arith.addf %44, %46 : vector<2x32xf32>
    %c0_20 = arith.constant 0 : index
    %c2_21 = arith.constant 2 : index
    %c0_22 = arith.constant 0 : index
    %48 = vector.load %arg5[%c0_20, %c2_21, %c0_22] : memref<1x16x32xf32, #tpu.memory_space<vmem>>, vector<1x2x32xf32>
    %49 = vector.shape_cast %48 : vector<1x2x32xf32> to vector<2x32xf32>
    %50 = vector.shape_cast %47 : vector<2x32xf32> to vector<1x2x32xf32>
    tpu.vector_store %arg5[%c0_20, %c2_21, %c0_22], %50 {strides = array<i32>} : memref<1x16x32xf32, #tpu.memory_space<vmem>>, vector<1x2x32xf32>,
    %51 = arith.truncf %47 : vector<2x32xf32> to vector<2x32xbf16>
    %cst_23 = arith.constant dense<0.000000e+00> : vector<2x96xf32>
    %52 = tpu.matmul %51, %1, %cst_23 {dimension_numbers = #tpu.dot_dimension_numbers<[1], [0], [0], [1], [0, 0, 1, 1], [], []>} : vector<2x32xbf16>, vector<32x96xbf16>, vector<2x96xf32> -> vector<2x96xf32>
    %c4 = arith.constant 4 : index
    %c0_24 = arith.constant 0 : index
    %53 = vector.load %arg6[%c4, %c0_24] : memref<16x96xf32, #tpu.memory_space<vmem>>, vector<2x96xf32>
    %54 = vector.extract_strided_slice %53 {offsets = [0, 32], sizes = [2, 64], strides = [1, 1]} : vector<2x96xf32> to vector<2x64xf32>
    %55 = vector.extract_strided_slice %52 {offsets = [0, 32], sizes = [2, 64], strides = [1, 1]} : vector<2x96xf32> to vector<2x64xf32>
    %56 = arith.addf %54, %55 : vector<2x64xf32>
    %57 = arith.negf %56 : vector<2x64xf32>
    %58 = math.exp %57 : vector<2x64xf32>
    %cst_25 = arith.constant 1.000000e+00 : f32
    %59 = vector.broadcast %cst_25 : f32 to vector<2x64xf32>
    %60 = arith.addf %59, %58 : vector<2x64xf32>
    %61 = arith.divf %59, %60 : vector<2x64xf32>
    %62 = vector.extract_strided_slice %61 {offsets = [0, 0], sizes = [2, 32], strides = [1, 1]} : vector<2x64xf32> to vector<2x32xf32>
    %63 = vector.extract_strided_slice %61 {offsets = [0, 32], sizes = [2, 32], strides = [1, 1]} : vector<2x64xf32> to vector<2x32xf32>
    %64 = vector.extract_strided_slice %53 {offsets = [0, 0], sizes = [2, 32], strides = [1, 1]} : vector<2x96xf32> to vector<2x32xf32>
    %65 = vector.extract_strided_slice %52 {offsets = [0, 0], sizes = [2, 32], strides = [1, 1]} : vector<2x96xf32> to vector<2x32xf32>
    %66 = arith.mulf %65, %63 : vector<2x32xf32>
    %67 = arith.addf %64, %66 : vector<2x32xf32>
    %68 = math.tanh %67 : vector<2x32xf32>
    %69 = arith.subf %47, %68 : vector<2x32xf32>
    %70 = arith.mulf %62, %69 : vector<2x32xf32>
    %71 = arith.addf %68, %70 : vector<2x32xf32>
    %c0_26 = arith.constant 0 : index
    %c4_27 = arith.constant 4 : index
    %c0_28 = arith.constant 0 : index
    %72 = vector.load %arg5[%c0_26, %c4_27, %c0_28] : memref<1x16x32xf32, #tpu.memory_space<vmem>>, vector<1x2x32xf32>
    %73 = vector.shape_cast %72 : vector<1x2x32xf32> to vector<2x32xf32>
    %74 = vector.shape_cast %71 : vector<2x32xf32> to vector<1x2x32xf32>
    tpu.vector_store %arg5[%c0_26, %c4_27, %c0_28], %74 {strides = array<i32>} : memref<1x16x32xf32, #tpu.memory_space<vmem>>, vector<1x2x32xf32>,
    %75 = arith.truncf %71 : vector<2x32xf32> to vector<2x32xbf16>
    %cst_29 = arith.constant dense<0.000000e+00> : vector<2x96xf32>
    %76 = tpu.matmul %75, %1, %cst_29 {dimension_numbers = #tpu.dot_dimension_numbers<[1], [0], [0], [1], [0, 0, 1, 1], [], []>} : vector<2x32xbf16>, vector<32x96xbf16>, vector<2x96xf32> -> vector<2x96xf32>
    %c6 = arith.constant 6 : index
    %c0_30 = arith.constant 0 : index
    %77 = vector.load %arg6[%c6, %c0_30] : memref<16x96xf32, #tpu.memory_space<vmem>>, vector<2x96xf32>
    %78 = vector.extract_strided_slice %77 {offsets = [0, 32], sizes = [2, 64], strides = [1, 1]} : vector<2x96xf32> to vector<2x64xf32>
    %79 = vector.extract_strided_slice %76 {offsets = [0, 32], sizes = [2, 64], strides = [1, 1]} : vector<2x96xf32> to vector<2x64xf32>
    %80 = arith.addf %78, %79 : vector<2x64xf32>
    %81 = arith.negf %80 : vector<2x64xf32>
    %82 = math.exp %81 : vector<2x64xf32>
    %cst_31 = arith.constant 1.000000e+00 : f32
    %83 = vector.broadcast %cst_31 : f32 to vector<2x64xf32>
    %84 = arith.addf %83, %82 : vector<2x64xf32>
    %85 = arith.divf %83, %84 : vector<2x64xf32>
    %86 = vector.extract_strided_slice %85 {offsets = [0, 0], sizes = [2, 32], strides = [1, 1]} : vector<2x64xf32> to vector<2x32xf32>
    %87 = vector.extract_strided_slice %85 {offsets = [0, 32], sizes = [2, 32], strides = [1, 1]} : vector<2x64xf32> to vector<2x32xf32>
    %88 = vector.extract_strided_slice %77 {offsets = [0, 0], sizes = [2, 32], strides = [1, 1]} : vector<2x96xf32> to vector<2x32xf32>
    %89 = vector.extract_strided_slice %76 {offsets = [0, 0], sizes = [2, 32], strides = [1, 1]} : vector<2x96xf32> to vector<2x32xf32>
    %90 = arith.mulf %89, %87 : vector<2x32xf32>
    %91 = arith.addf %88, %90 : vector<2x32xf32>
    %92 = math.tanh %91 : vector<2x32xf32>
    %93 = arith.subf %71, %92 : vector<2x32xf32>
    %94 = arith.mulf %86, %93 : vector<2x32xf32>
    %95 = arith.addf %92, %94 : vector<2x32xf32>
    %c0_32 = arith.constant 0 : index
    %c6_33 = arith.constant 6 : index
    %c0_34 = arith.constant 0 : index
    %96 = vector.load %arg5[%c0_32, %c6_33, %c0_34] : memref<1x16x32xf32, #tpu.memory_space<vmem>>, vector<1x2x32xf32>
    %97 = vector.shape_cast %96 : vector<1x2x32xf32> to vector<2x32xf32>
    %98 = vector.shape_cast %95 : vector<2x32xf32> to vector<1x2x32xf32>
    tpu.vector_store %arg5[%c0_32, %c6_33, %c0_34], %98 {strides = array<i32>} : memref<1x16x32xf32, #tpu.memory_space<vmem>>, vector<1x2x32xf32>,
    %99 = arith.truncf %95 : vector<2x32xf32> to vector<2x32xbf16>
    %cst_35 = arith.constant dense<0.000000e+00> : vector<2x96xf32>
    %100 = tpu.matmul %99, %1, %cst_35 {dimension_numbers = #tpu.dot_dimension_numbers<[1], [0], [0], [1], [0, 0, 1, 1], [], []>} : vector<2x32xbf16>, vector<32x96xbf16>, vector<2x96xf32> -> vector<2x96xf32>
    %c8 = arith.constant 8 : index
    %c0_36 = arith.constant 0 : index
    %101 = vector.load %arg6[%c8, %c0_36] : memref<16x96xf32, #tpu.memory_space<vmem>>, vector<2x96xf32>
    %102 = vector.extract_strided_slice %101 {offsets = [0, 32], sizes = [2, 64], strides = [1, 1]} : vector<2x96xf32> to vector<2x64xf32>
    %103 = vector.extract_strided_slice %100 {offsets = [0, 32], sizes = [2, 64], strides = [1, 1]} : vector<2x96xf32> to vector<2x64xf32>
    %104 = arith.addf %102, %103 : vector<2x64xf32>
    %105 = arith.negf %104 : vector<2x64xf32>
    %106 = math.exp %105 : vector<2x64xf32>
    %cst_37 = arith.constant 1.000000e+00 : f32
    %107 = vector.broadcast %cst_37 : f32 to vector<2x64xf32>
    %108 = arith.addf %107, %106 : vector<2x64xf32>
    %109 = arith.divf %107, %108 : vector<2x64xf32>
    %110 = vector.extract_strided_slice %109 {offsets = [0, 0], sizes = [2, 32], strides = [1, 1]} : vector<2x64xf32> to vector<2x32xf32>
    %111 = vector.extract_strided_slice %109 {offsets = [0, 32], sizes = [2, 32], strides = [1, 1]} : vector<2x64xf32> to vector<2x32xf32>
    %112 = vector.extract_strided_slice %101 {offsets = [0, 0], sizes = [2, 32], strides = [1, 1]} : vector<2x96xf32> to vector<2x32xf32>
    %113 = vector.extract_strided_slice %100 {offsets = [0, 0], sizes = [2, 32], strides = [1, 1]} : vector<2x96xf32> to vector<2x32xf32>
    %114 = arith.mulf %113, %111 : vector<2x32xf32>
    %115 = arith.addf %112, %114 : vector<2x32xf32>
    %116 = math.tanh %115 : vector<2x32xf32>
    %117 = arith.subf %95, %116 : vector<2x32xf32>
    %118 = arith.mulf %110, %117 : vector<2x32xf32>
    %119 = arith.addf %116, %118 : vector<2x32xf32>
    %c0_38 = arith.constant 0 : index
    %c8_39 = arith.constant 8 : index
    %c0_40 = arith.constant 0 : index
    %120 = vector.load %arg5[%c0_38, %c8_39, %c0_40] : memref<1x16x32xf32, #tpu.memory_space<vmem>>, vector<1x2x32xf32>
    %121 = vector.shape_cast %120 : vector<1x2x32xf32> to vector<2x32xf32>
    %122 = vector.shape_cast %119 : vector<2x32xf32> to vector<1x2x32xf32>
    tpu.vector_store %arg5[%c0_38, %c8_39, %c0_40], %122 {strides = array<i32>} : memref<1x16x32xf32, #tpu.memory_space<vmem>>, vector<1x2x32xf32>,
    %123 = arith.truncf %119 : vector<2x32xf32> to vector<2x32xbf16>
    %cst_41 = arith.constant dense<0.000000e+00> : vector<2x96xf32>
    %124 = tpu.matmul %123, %1, %cst_41 {dimension_numbers = #tpu.dot_dimension_numbers<[1], [0], [0], [1], [0, 0, 1, 1], [], []>} : vector<2x32xbf16>, vector<32x96xbf16>, vector<2x96xf32> -> vector<2x96xf32>
    %c10 = arith.constant 10 : index
    %c0_42 = arith.constant 0 : index
    %125 = vector.load %arg6[%c10, %c0_42] : memref<16x96xf32, #tpu.memory_space<vmem>>, vector<2x96xf32>
    %126 = vector.extract_strided_slice %125 {offsets = [0, 32], sizes = [2, 64], strides = [1, 1]} : vector<2x96xf32> to vector<2x64xf32>
    %127 = vector.extract_strided_slice %124 {offsets = [0, 32], sizes = [2, 64], strides = [1, 1]} : vector<2x96xf32> to vector<2x64xf32>
    %128 = arith.addf %126, %127 : vector<2x64xf32>
    %129 = arith.negf %128 : vector<2x64xf32>
    %130 = math.exp %129 : vector<2x64xf32>
    %cst_43 = arith.constant 1.000000e+00 : f32
    %131 = vector.broadcast %cst_43 : f32 to vector<2x64xf32>
    %132 = arith.addf %131, %130 : vector<2x64xf32>
    %133 = arith.divf %131, %132 : vector<2x64xf32>
    %134 = vector.extract_strided_slice %133 {offsets = [0, 0], sizes = [2, 32], strides = [1, 1]} : vector<2x64xf32> to vector<2x32xf32>
    %135 = vector.extract_strided_slice %133 {offsets = [0, 32], sizes = [2, 32], strides = [1, 1]} : vector<2x64xf32> to vector<2x32xf32>
    %136 = vector.extract_strided_slice %125 {offsets = [0, 0], sizes = [2, 32], strides = [1, 1]} : vector<2x96xf32> to vector<2x32xf32>
    %137 = vector.extract_strided_slice %124 {offsets = [0, 0], sizes = [2, 32], strides = [1, 1]} : vector<2x96xf32> to vector<2x32xf32>
    %138 = arith.mulf %137, %135 : vector<2x32xf32>
    %139 = arith.addf %136, %138 : vector<2x32xf32>
    %140 = math.tanh %139 : vector<2x32xf32>
    %141 = arith.subf %119, %140 : vector<2x32xf32>
    %142 = arith.mulf %134, %141 : vector<2x32xf32>
    %143 = arith.addf %140, %142 : vector<2x32xf32>
    %c0_44 = arith.constant 0 : index
    %c10_45 = arith.constant 10 : index
    %c0_46 = arith.constant 0 : index
    %144 = vector.load %arg5[%c0_44, %c10_45, %c0_46] : memref<1x16x32xf32, #tpu.memory_space<vmem>>, vector<1x2x32xf32>
    %145 = vector.shape_cast %144 : vector<1x2x32xf32> to vector<2x32xf32>
    %146 = vector.shape_cast %143 : vector<2x32xf32> to vector<1x2x32xf32>
    tpu.vector_store %arg5[%c0_44, %c10_45, %c0_46], %146 {strides = array<i32>} : memref<1x16x32xf32, #tpu.memory_space<vmem>>, vector<1x2x32xf32>,
    %147 = arith.truncf %143 : vector<2x32xf32> to vector<2x32xbf16>
    %cst_47 = arith.constant dense<0.000000e+00> : vector<2x96xf32>
    %148 = tpu.matmul %147, %1, %cst_47 {dimension_numbers = #tpu.dot_dimension_numbers<[1], [0], [0], [1], [0, 0, 1, 1], [], []>} : vector<2x32xbf16>, vector<32x96xbf16>, vector<2x96xf32> -> vector<2x96xf32>
    %c12 = arith.constant 12 : index
    %c0_48 = arith.constant 0 : index
    %149 = vector.load %arg6[%c12, %c0_48] : memref<16x96xf32, #tpu.memory_space<vmem>>, vector<2x96xf32>
    %150 = vector.extract_strided_slice %149 {offsets = [0, 32], sizes = [2, 64], strides = [1, 1]} : vector<2x96xf32> to vector<2x64xf32>
    %151 = vector.extract_strided_slice %148 {offsets = [0, 32], sizes = [2, 64], strides = [1, 1]} : vector<2x96xf32> to vector<2x64xf32>
    %152 = arith.addf %150, %151 : vector<2x64xf32>
    %153 = arith.negf %152 : vector<2x64xf32>
    %154 = math.exp %153 : vector<2x64xf32>
    %cst_49 = arith.constant 1.000000e+00 : f32
    %155 = vector.broadcast %cst_49 : f32 to vector<2x64xf32>
    %156 = arith.addf %155, %154 : vector<2x64xf32>
    %157 = arith.divf %155, %156 : vector<2x64xf32>
    %158 = vector.extract_strided_slice %157 {offsets = [0, 0], sizes = [2, 32], strides = [1, 1]} : vector<2x64xf32> to vector<2x32xf32>
    %159 = vector.extract_strided_slice %157 {offsets = [0, 32], sizes = [2, 32], strides = [1, 1]} : vector<2x64xf32> to vector<2x32xf32>
    %160 = vector.extract_strided_slice %149 {offsets = [0, 0], sizes = [2, 32], strides = [1, 1]} : vector<2x96xf32> to vector<2x32xf32>
    %161 = vector.extract_strided_slice %148 {offsets = [0, 0], sizes = [2, 32], strides = [1, 1]} : vector<2x96xf32> to vector<2x32xf32>
    %162 = arith.mulf %161, %159 : vector<2x32xf32>
    %163 = arith.addf %160, %162 : vector<2x32xf32>
    %164 = math.tanh %163 : vector<2x32xf32>
    %165 = arith.subf %143, %164 : vector<2x32xf32>
    %166 = arith.mulf %158, %165 : vector<2x32xf32>
    %167 = arith.addf %164, %166 : vector<2x32xf32>
    %c0_50 = arith.constant 0 : index
    %c12_51 = arith.constant 12 : index
    %c0_52 = arith.constant 0 : index
    %168 = vector.load %arg5[%c0_50, %c12_51, %c0_52] : memref<1x16x32xf32, #tpu.memory_space<vmem>>, vector<1x2x32xf32>
    %169 = vector.shape_cast %168 : vector<1x2x32xf32> to vector<2x32xf32>
    %170 = vector.shape_cast %167 : vector<2x32xf32> to vector<1x2x32xf32>
    tpu.vector_store %arg5[%c0_50, %c12_51, %c0_52], %170 {strides = array<i32>} : memref<1x16x32xf32, #tpu.memory_space<vmem>>, vector<1x2x32xf32>,
    %171 = arith.truncf %167 : vector<2x32xf32> to vector<2x32xbf16>
    %cst_53 = arith.constant dense<0.000000e+00> : vector<2x96xf32>
    %172 = tpu.matmul %171, %1, %cst_53 {dimension_numbers = #tpu.dot_dimension_numbers<[1], [0], [0], [1], [0, 0, 1, 1], [], []>} : vector<2x32xbf16>, vector<32x96xbf16>, vector<2x96xf32> -> vector<2x96xf32>
    %c14 = arith.constant 14 : index
    %c0_54 = arith.constant 0 : index
    %173 = vector.load %arg6[%c14, %c0_54] : memref<16x96xf32, #tpu.memory_space<vmem>>, vector<2x96xf32>
    %174 = vector.extract_strided_slice %173 {offsets = [0, 32], sizes = [2, 64], strides = [1, 1]} : vector<2x96xf32> to vector<2x64xf32>
    %175 = vector.extract_strided_slice %172 {offsets = [0, 32], sizes = [2, 64], strides = [1, 1]} : vector<2x96xf32> to vector<2x64xf32>
    %176 = arith.addf %174, %175 : vector<2x64xf32>
    %177 = arith.negf %176 : vector<2x64xf32>
    %178 = math.exp %177 : vector<2x64xf32>
    %cst_55 = arith.constant 1.000000e+00 : f32
    %179 = vector.broadcast %cst_55 : f32 to vector<2x64xf32>
    %180 = arith.addf %179, %178 : vector<2x64xf32>
    %181 = arith.divf %179, %180 : vector<2x64xf32>
    %182 = vector.extract_strided_slice %181 {offsets = [0, 0], sizes = [2, 32], strides = [1, 1]} : vector<2x64xf32> to vector<2x32xf32>
    %183 = vector.extract_strided_slice %181 {offsets = [0, 32], sizes = [2, 32], strides = [1, 1]} : vector<2x64xf32> to vector<2x32xf32>
    %184 = vector.extract_strided_slice %173 {offsets = [0, 0], sizes = [2, 32], strides = [1, 1]} : vector<2x96xf32> to vector<2x32xf32>
    %185 = vector.extract_strided_slice %172 {offsets = [0, 0], sizes = [2, 32], strides = [1, 1]} : vector<2x96xf32> to vector<2x32xf32>
    %186 = arith.mulf %185, %183 : vector<2x32xf32>
    %187 = arith.addf %184, %186 : vector<2x32xf32>
    %188 = math.tanh %187 : vector<2x32xf32>
    %189 = arith.subf %167, %188 : vector<2x32xf32>
    %190 = arith.mulf %182, %189 : vector<2x32xf32>
    %191 = arith.addf %188, %190 : vector<2x32xf32>
    %c0_56 = arith.constant 0 : index
    %c14_57 = arith.constant 14 : index
    %c0_58 = arith.constant 0 : index
    %192 = vector.load %arg5[%c0_56, %c14_57, %c0_58] : memref<1x16x32xf32, #tpu.memory_space<vmem>>, vector<1x2x32xf32>
    %193 = vector.shape_cast %192 : vector<1x2x32xf32> to vector<2x32xf32>
    %194 = vector.shape_cast %191 : vector<2x32xf32> to vector<1x2x32xf32>
    tpu.vector_store %arg5[%c0_56, %c14_57, %c0_58], %194 {strides = array<i32>} : memref<1x16x32xf32, #tpu.memory_space<vmem>>, vector<1x2x32xf32>,
    return
  }
  func.func @transform_0(%arg0: i32) -> (i32, i32, i32) {
    %c0_i32 = arith.constant 0 : i32
    %c0_i32_0 = arith.constant 0 : i32
    %c0_i32_1 = arith.constant 0 : i32
    return %arg0, %c0_i32, %c0_i32_0 : i32, i32, i32
  }
  func.func @transform_1(%arg0: i32) -> (i32, i32) {
    %c0_i32 = arith.constant 0 : i32
    %c0_i32_0 = arith.constant 0 : i32
    %c0_i32_1 = arith.constant 0 : i32
    return %c0_i32, %c0_i32_0 : i32, i32
  }
  func.func @transform_2(%arg0: i32) -> (i32, i32) {
    %c0_i32 = arith.constant 0 : i32
    %c0_i32_0 = arith.constant 0 : i32
    %c0_i32_1 = arith.constant 0 : i32
    return %c0_i32, %c0_i32_0 : i32, i32
  }
  func.func @transform_3(%arg0: i32) -> (i32, i32) {
    %c0_i32 = arith.constant 0 : i32
    %c0_i32_0 = arith.constant 0 : i32
    %c0_i32_1 = arith.constant 0 : i32
    return %c0_i32, %c0_i32_0 : i32, i32
  }
  func.func @transform_4(%arg0: i32) -> (i32, i32, i32) {
    %c0_i32 = arith.constant 0 : i32
    %c0_i32_0 = arith.constant 0 : i32
    %c0_i32_1 = arith.constant 0 : i32
    return %arg0, %c0_i32, %c0_i32_0 : i32, i32, i32
  }
}

</mosaic_0001>

<bundles_post_ra>
// kernel: bcmgru_layer.1
= control target key start
LH: loop header
LB: loop body
LE: loop exit
PB: predicated region body
PF: predicated region fallthrough
CT: control target
= control target key end

     0   :  { %9 = vsyncpa [#allocation4], 0  ;;  %s1121_s0 = inlined_call_operand.hbm [shape: f32[1,16,16], index: 0, kind: input, shape index: {}]   ;;  %s1122_s1 = inlined_call_operand.hbm [shape: f32[16,96], index: 1, kind: input, shape index: {}]   ;;  %s1123_s2 = inlined_call_operand.hbm [shape: f32[32,96], index: 2, kind: input, shape index: {}]   ;;  %s1124_s3 = inlined_call_operand.vmem [shape: f32[1,96], index: 3, kind: input, shape index: {}]   ;;  %s1125_s4 = inlined_call_operand.hbm [shape: f32[1,16,32], index: 4, kind: output, shape index: {}]  }
   0x1   :  { %10 = vsyncpa [#allocation7], 0 }
   0x2   :  { %11 = vsyncpa [#allocation5], 0  ;;  %s921_s15 = smov [#allocation6]   ;;  %s922_s17 = smov [#allocation3]  }
   0x3   :  { %s29_s16 = sshll.u32 %s921_s15, 4  ;;  %s17_s18 = sshll.u32 %s922_s17, 4  ;;  %s30_s16 = int_to_ptr.vmem [resolvable:$true] %s29_s16  ;;  %s957_s18 = int_to_ptr.vmem [resolvable:$true] %s17_s18 }
   0x4   :  { %s827_s21 = scalar_lea.hbm %s1122_s1, 256 }
   0x5   :  { %p828_p0 = scmp.ne.s32.totalorder %s1122_s1, %s827_s21  ;;  %p831_p1 = scmp.lt.u32.totalorder %s827_s21, %s1122_s1 }
   0x7   :  { %p833_p2 = pnand %p831_p1, %p828_p0 }
   0x9   :  { %836 = shalt.err (!%p833_p2)
}
   0xa   :  { %s837_s26 = scalar_lea.vmem %s30_s16, 256  ;;  %p842_p4 = scmp.lt.s32.totalorder %s30_s16, %s30_s16 }
   0xb   :  { %p838_p3 = scmp.ne.s32.totalorder %s30_s16, %s837_s26  ;;  %p843_p5 = scmp.lt.s32.totalorder %s837_s26, %s837_s26 }
   0xd   :  { %p844_p6 = por %p843_p5, %p842_p4 }
   0xf   :  { %p845_p7 = pnand %p844_p6, %p838_p3 }
  0x11   :  { %848 = shalt.err (!%p845_p7)
}
  0x12   :  { %s923_s27 = smov 128   ;;  %s924_s28 = smov 8  }
  0x13   :  { %35 = dma.hbm_to_vmem [thread:$0]  %s1122_s1, 256, %s30_s16, [#allocation7], %s923_s27, %s923_s27, %s924_s28  }
  0x14   :  { %s849_s7 = scalar_lea.hbm %s1121_s0, 256 }
  0x15   :  { %p850_p8 = scmp.ne.s32.totalorder %s1121_s0, %s849_s7  ;;  %p853_p9 = scmp.lt.u32.totalorder %s849_s7, %s1121_s0 }
  0x17   :  { %p855_p10 = pnand %p853_p9, %p850_p8 }
  0x19   :  { %858 = shalt.err (!%p855_p10)
}
  0x1a   :  { %s859_s12 = scalar_lea.vmem %s957_s18, 256  ;;  %p864_p12 = scmp.lt.s32.totalorder %s957_s18, %s957_s18 }
  0x1b   :  { %p860_p11 = scmp.ne.s32.totalorder %s957_s18, %s859_s12  ;;  %p865_p13 = scmp.lt.s32.totalorder %s859_s12, %s859_s12 }
  0x1d   :  { %p866_p0 = por %p865_p13, %p864_p12 }
  0x1f   :  { %p867_p1 = pnand %p866_p0, %p860_p11 }
  0x21   :  { %870 = shalt.err (!%p867_p1)
}
  0x22   :  { %23 = dma.hbm_to_vmem [thread:$0]  %s1121_s0, 256, %s957_s18, [#allocation4], %s923_s27, %s923_s27, %s924_s28  }
  0x23   :  { %s925_s14 = smov [#allocation8]   ;;  %s871_s19 = scalar_lea.hbm %s1123_s2, 512 }
  0x24   :  { %s41_s15 = sshll.u32 %s925_s14, 4  ;;  %p872_p2 = scmp.ne.s32.totalorder %s1123_s2, %s871_s19  ;;  %s42_s15 = int_to_ptr.vmem [resolvable:$true] %s41_s15 }
  0x25   :  { %p875_p3 = scmp.lt.u32.totalorder %s871_s19, %s1123_s2 }
  0x27   :  { %p877_p4 = pnand %p875_p3, %p872_p2 }
  0x29   :  { %880 = shalt.err (!%p877_p4)
}
  0x2a   :  { %s881_s24 = scalar_lea.vmem %s42_s15, 512  ;;  %p886_p6 = scmp.lt.s32.totalorder %s42_s15, %s42_s15 }
  0x2b   :  { %p882_p5 = scmp.ne.s32.totalorder %s42_s15, %s881_s24  ;;  %p887_p7 = scmp.lt.s32.totalorder %s881_s24, %s881_s24 }
  0x2d   :  { %p888_p8 = por %p887_p7, %p886_p6 }
  0x2f   :  { %p889_p9 = pnand %p888_p8, %p882_p5 }
  0x31   :  { %892 = shalt.err (!%p889_p9)
}
  0x32   :  { %47 = dma.hbm_to_vmem [thread:$0]  %s1123_s2, 512, %s42_s15, [#allocation7], %s923_s27, %s923_s27, %s924_s28  }
  0x33   :  { %915 = dma.done.wait [#allocation4], 256  }
  0x34   :  { %916 = vsyncadd [#allocation4], 4294967040 }
  0x35   :  { %917 = dma.done.wait [#allocation7], 768  }
  0x36   :  { %918 = vsyncadd [#allocation7], 4294966528  ;;  %v926_v0 = vmov 0.0   ;;  %vm927_vm0 = vmmov 0   ;;  %v69_v1 = vld [vmem:[#allocation6] sm:$0xff]  ;;  %v70_v2 = vld [vmem:[#allocation6 + $0x8] sm:$0xff] }
  0x37   :  { %706 = vmatprep.subr.bf16.mxu0 %v926_v0  ;;  %708 = vmatprep.mubr.msk.bf16.mxu0 %vm927_vm0, %v926_v0  ;;  %v66_v3 = vld [vmem:[#allocation3] sm:$0xff]  ;;  %v71_v4 = vpack.c.bf16 %v70_v2, %v69_v1  ;;  %v67_v5 = vld [vmem:[#allocation3 + $0x8] sm:$0xff]  ;;  %vm79_vm1 = vcmask 130048   ;;  %v666_v7 = vld [vmem:[%s1124_s3] ss:$0 sm:$0xff]  ;;  %vm124_vm2 = vcmask 785408  }
  0x38   :  { %712 = vmatprep.subr.bf16.mxu1 %v926_v0  ;;  %716 = vmatprep.mubr.msk.bf16.mxu1 %vm927_vm0, %v926_v0  ;;  %v68_v6 = vpack.c.bf16 %v67_v5, %v66_v3  ;;  %v60_v15 = vld [vmem:[#allocation8] sm:$0xff]  ;;  %v61_v16 = vld [vmem:[#allocation8 + $0x8] sm:$0xff]  ;;  %v62_v17 = vld [vmem:[#allocation8 + $0x10] sm:$0xff]  ;;  %s928_s3 = smov 32   ;;  %s929_s26 = smov 96   ;;  %vm151_vm3 = vcmask 261120  }
  0x39   :  { %707 = vmatpush3.bf16.msra.mxu0 %v71_v4  ;;  %v1021_v18 = vpack.c.bf16 %v61_v16, %v60_v15  ;;  %v63_v19 = vld [vmem:[#allocation8 + $0x18] sm:$0xff]  ;;  %s930_s29 = smov 64   ;;  %vm145_vm4 = vcmask 254976   ;;  %s931_s30 = smov [#allocation9]  }
  0x3a   :  { %720 = vmatprep.subr.bf16.mxu0 %v926_v0  ;;  %v1024_v20 = vpack.c.bf16 %v63_v19, %v62_v17  ;;  %s653_s5 = sshll.u32 %s931_s30, 4  ;;  %s654_s5 = int_to_ptr.vmem [resolvable:$true] %s653_s5 }
  0x3b   :  { %713 = vmatpush3.bf16.msra.mxu1 %v1021_v18  ;;  %s893_s6 = scalar_lea.vmem %s654_s5, 256  ;;  %p898_p11 = scmp.lt.s32.totalorder %s654_s5, %s654_s5 }
  0x3c   :  { %709 = vmatmul.mubr.msk.bf16.vlgmr.msra.gmra.mrb[0].mxu0 %vm79_vm1, %v68_v6  ;;  %714 = vmatprep.subr.bf16.mxu1 %v926_v0  ;;  %p894_p10 = scmp.ne.s32.totalorder %s654_s5, %s893_s6  ;;  %p899_p12 = scmp.lt.s32.totalorder %s893_s6, %s893_s6 }
  0x3d   :  { %724 = vmatprep.mubr.msk.bf16.mxu0 %vm927_vm0, %v926_v0  ;;  %721 = vmatpush3.bf16.msra.mxu0 %v1021_v18 }
  0x3e   :  { %722 = vmatprep.subr.bf16.mxu0 %v926_v0  ;;  %p900_p13 = por %p899_p12, %p898_p11 }
  0x3f   :  { %715 = vmatpush3.bf16.msra.mxu1 %v1024_v20 }
  0x40   :  { %728 = vmatprep.subr.bf16.mxu1 %v926_v0  ;;  %p901_p0 = pnand %p900_p13, %p894_p10 }
  0x41   :  { %723 = vmatpush3.bf16.msra.mxu0 %v1024_v20 }
  0x42   :  { %736 = vmatprep.subr.bf16.mxu0 %v926_v0 }
 0x10f   :  { %v117_v8 = vpop.f32.mrb[0].mxu0 }
 0x110   :  { %v118_v9 = vadd.f32 %v666_v7, %v117_v8  ;;  %v710_v10 = vpop.f32.mrb[1].mxu0 }
 0x111   :  { %v120_v11 = vpop.f32.mrb[2].mxu0 }
 0x112   :  { %125 = vst.msk [vmem:[#allocation2] sm:$0xff] %vm124_vm2, %v118_v9  ;;  %v121_v12 = vadd.f32 %v666_v7, %v120_v11  ;;  %v711_v13 = vpop.f32.mrb[3].mxu0 }
 0x114   :  { %126 = vst.msk [vmem:[#allocation2 + $0x8] sm:$0xff] %vm124_vm2, %v121_v12 }
 0x119   :  { %v127_v14 = vld [vmem:[#allocation2] sm:$0x3]  ;;  %v195_v32 = vld [vmem:[#allocation2 + $0x2] sm:$0x3]  ;;  %v266_v52 = vld [vmem:[#allocation2 + $0x4] sm:$0x3] }
 0x11a   :  { %779 = vtanh.f32 %v127_v14  ;;  %v668_v22 = vmul.f32 -1.442695, %v127_v14  ;;  %v337_v9 = vld [vmem:[#allocation2 + $0x6] sm:$0x3] }
 0x11c   :  { %781 = vpow2.f32 %v668_v22 }
 0x124   :  { %v780_v21 = vpop.eup %779 }
 0x125   :  { %137 = vrot.lane.b32.xlu0 %v780_v21, %s928_s3 }
 0x126   :  { %v782_v23 = vpop.eup %781 }
 0x127   :  { %v131_v24 = vadd.f32 1.0, %v782_v23 }
 0x129   :  { %783 = vrcp.f32 %v131_v24 }
 0x133   :  { %v784_v25 = vpop.eup %783 }
 0x134   :  { %v134_v26 = vsub.f32 1.0, %v784_v25 }
 0x197   :  { %v138_v27 = vpop.permute.xlu0 %137 }
 0x198   :  { %v1034_v28 = vmul.f32 %v138_v27, %v134_v26 }
 0x19a   :  { %v147_v29 = vpack.c.bf16 %v1034_v28, %v1034_v28 }
 0x19c   :  { %149 = vrot.lane.b32.xlu0 %v147_v29, %s929_s26 }
 0x20e   :  { %v150_v30 = vpop.permute.xlu0 %149 }
 0x20f   :  { %717 = vmatmul.mubr.msk.bf16.vlgmr.msra.gmra.mrb[0].mxu1 %vm151_vm3, %v150_v30 }
 0x210   :  { %729 = vmatpush3.bf16.msra.mxu1 %v1021_v18  ;;  %732 = vmatprep.mubr.msk.bf16.mxu1 %vm927_vm0, %v926_v0 }
 0x211   :  { %730 = vmatprep.subr.bf16.mxu1 %v926_v0 }
 0x214   :  { %731 = vmatpush3.bf16.msra.mxu1 %v1024_v20 }
 0x215   :  { %744 = vmatprep.subr.bf16.mxu1 %v926_v0 }
 0x2e2   :  { %v189_v31 = vpop.f32.mrb[0].mxu1 }
 0x2e3   :  { %v196_v33 = vadd.f32 %v195_v32, %v189_v31  ;;  %v718_v34 = vpop.f32.mrb[1].mxu1 }
 0x2e4   :  { %v192_v35 = vpop.f32.mrb[2].mxu1 }
 0x2e5   :  { %v670_v36 = vmul.f32 -1.442695, %v196_v33  ;;  %v719_v37 = vpop.f32.mrb[3].mxu1 }
 0x2e7   :  { %785 = vpow2.f32 %v670_v36 }
 0x2f1   :  { %v786_v38 = vpop.eup %785 }
 0x2f2   :  { %v200_v39 = vadd.f32 1.0, %v786_v38 }
 0x2f4   :  { %787 = vrcp.f32 %v200_v39 }
 0x2fe   :  { %v788_v40 = vpop.eup %787 }
 0x2ff   :  { %204 = vrot.lane.b32.xlu1 %v788_v40, %s930_s29 }
 0x371   :  { %v205_v41 = vpop.permute.xlu1 %204 }
 0x372   :  { %v207_v42 = vmul.f32 %v205_v41, %v189_v31 }
 0x374   :  { %v208_v43 = vadd.f32 %v207_v42, %v195_v32  ;;  %v408_v32 = vld [vmem:[#allocation2 + $0x8] sm:$0x3] }
 0x376   :  { %789 = vtanh.f32 %v208_v43 }
 0x380   :  { %v790_v44 = vpop.eup %789 }
 0x381   :  { %211 = vrot.lane.b32.xlu1 %v790_v44, %s928_s3 }
 0x3f3   :  { %v212_v45 = vpop.permute.xlu1 %211 }
 0x3f4   :  { %v214_v46 = vsub.f32 %v1034_v28, %v212_v45 }
 0x3f6   :  { %v215_v47 = vmul.f32 %v788_v40, %v214_v46 }
 0x3f8   :  { %217 = vrot.lane.b32.xlu0 %v215_v47, %s929_s26 }
 0x46a   :  { %v218_v48 = vpop.permute.xlu0 %217 }
 0x46b   :  { %v220_v49 = vadd.f32 %v790_v44, %v218_v48 }
 0x46d   :  { %221 = vst.msk [vmem:[#allocation9 + $0x2] sm:$0x3] %vm145_vm4, %v220_v49  ;;  %v222_v50 = vpack.c.bf16 %v220_v49, %v220_v49 }
 0x46f   :  { %725 = vmatmul.mubr.msk.bf16.vlgmr.msra.gmra.mrb[4].mxu0 %vm151_vm3, %v222_v50 }
 0x470   :  { %737 = vmatpush3.bf16.msra.mxu0 %v1021_v18  ;;  %740 = vmatprep.mubr.msk.bf16.mxu0 %vm927_vm0, %v926_v0 }
 0x471   :  { %738 = vmatprep.subr.bf16.mxu0 %v926_v0 }
 0x474   :  { %739 = vmatpush3.bf16.msra.mxu0 %v1024_v20 }
 0x475   :  { %752 = vmatprep.subr.bf16.mxu0 %v926_v0 }
 0x542   :  { %v260_v51 = vpop.f32.mrb[4].mxu0 }
 0x543   :  { %v267_v53 = vadd.f32 %v266_v52, %v260_v51  ;;  %v726_v54 = vpop.f32.mrb[5].mxu0 }
 0x544   :  { %v263_v55 = vpop.f32.mrb[6].mxu0 }
 0x545   :  { %v672_v56 = vmul.f32 -1.442695, %v267_v53  ;;  %v727_v57 = vpop.f32.mrb[7].mxu0 }
 0x547   :  { %791 = vpow2.f32 %v672_v56 }
 0x551   :  { %v792_v58 = vpop.eup %791 }
 0x552   :  { %v271_v59 = vadd.f32 1.0, %v792_v58 }
 0x554   :  { %793 = vrcp.f32 %v271_v59 }
 0x55e   :  { %v794_v60 = vpop.eup %793 }
 0x55f   :  { %275 = vrot.lane.b32.xlu1 %v794_v60, %s930_s29 }
 0x5d1   :  { %v276_v61 = vpop.permute.xlu1 %275 }
 0x5d2   :  { %v278_v62 = vmul.f32 %v276_v61, %v260_v51 }
 0x5d4   :  { %v279_v63 = vadd.f32 %v278_v62, %v266_v52  ;;  %v479_v52 = vld [vmem:[#allocation2 + $0xa] sm:$0x3] }
 0x5d6   :  { %795 = vtanh.f32 %v279_v63 }
 0x5e0   :  { %v796_v1 = vpop.eup %795 }
 0x5e1   :  { %v281_v2 = vsub.f32 %v220_v49, %v796_v1 }
 0x5e3   :  { %283 = vrot.lane.b32.xlu0 %v281_v2, %s928_s3 }
 0x655   :  { %v284_v3 = vpop.permute.xlu0 %283 }
 0x656   :  { %v286_v4 = vmul.f32 %v794_v60, %v284_v3 }
 0x658   :  { %288 = vrot.lane.b32.xlu1 %v286_v4, %s929_s26 }
 0x6ca   :  { %v289_v5 = vpop.permute.xlu1 %288 }
 0x6cb   :  { %v291_v6 = vadd.f32 %v796_v1, %v289_v5 }
 0x6cd   :  { %292 = vst.msk [vmem:[#allocation9 + $0x4] sm:$0x3] %vm145_vm4, %v291_v6  ;;  %v293_v7 = vpack.c.bf16 %v291_v6, %v291_v6 }
 0x6cf   :  { %733 = vmatmul.mubr.msk.bf16.vlgmr.msra.gmra.mrb[4].mxu1 %vm151_vm3, %v293_v7 }
 0x6d0   :  { %745 = vmatpush3.bf16.msra.mxu1 %v1021_v18  ;;  %748 = vmatprep.mubr.msk.bf16.mxu1 %vm927_vm0, %v926_v0 }
 0x6d1   :  { %746 = vmatprep.subr.bf16.mxu1 %v926_v0 }
 0x6d4   :  { %747 = vmatpush3.bf16.msra.mxu1 %v1024_v20 }
 0x6d5   :  { %760 = vmatprep.subr.bf16.mxu1 %v926_v0 }
 0x7a2   :  { %v331_v8 = vpop.f32.mrb[4].mxu1 }
 0x7a3   :  { %v338_v10 = vadd.f32 %v337_v9, %v331_v8  ;;  %v734_v11 = vpop.f32.mrb[5].mxu1 }
 0x7a4   :  { %v334_v12 = vpop.f32.mrb[6].mxu1 }
 0x7a5   :  { %v674_v13 = vmul.f32 -1.442695, %v338_v10  ;;  %v735_v14 = vpop.f32.mrb[7].mxu1 }
 0x7a7   :  { %797 = vpow2.f32 %v674_v13 }
 0x7b1   :  { %v798_v15 = vpop.eup %797 }
 0x7b2   :  { %v342_v16 = vadd.f32 1.0, %v798_v15 }
 0x7b4   :  { %799 = vrcp.f32 %v342_v16 }
 0x7be   :  { %v800_v17 = vpop.eup %799 }
 0x7bf   :  { %346 = vrot.lane.b32.xlu0 %v800_v17, %s930_s29 }
 0x831   :  { %v347_v19 = vpop.permute.xlu0 %346 }
 0x832   :  { %v349_v21 = vmul.f32 %v347_v19, %v331_v8 }
 0x834   :  { %v350_v22 = vadd.f32 %v349_v21, %v337_v9 }
 0x836   :  { %801 = vtanh.f32 %v350_v22 }
 0x840   :  { %v802_v23 = vpop.eup %801 }
 0x841   :  { %v352_v24 = vsub.f32 %v291_v6, %v802_v23  ;;  %v550_v6 = vld [vmem:[#allocation2 + $0xc] sm:$0x3] }
 0x843   :  { %354 = vrot.lane.b32.xlu1 %v352_v24, %s928_s3 }
 0x8b5   :  { %v355_v25 = vpop.permute.xlu1 %354 }
 0x8b6   :  { %v357_v26 = vmul.f32 %v800_v17, %v355_v25 }
 0x8b8   :  { %359 = vrot.lane.b32.xlu0 %v357_v26, %s929_s26 }
 0x92a   :  { %v360_v27 = vpop.permute.xlu0 %359 }
 0x92b   :  { %v362_v29 = vadd.f32 %v802_v23, %v360_v27 }
 0x92d   :  { %363 = vst.msk [vmem:[#allocation9 + $0x6] sm:$0x3] %vm145_vm4, %v362_v29  ;;  %v364_v30 = vpack.c.bf16 %v362_v29, %v362_v29 }
 0x92f   :  { %741 = vmatmul.mubr.msk.bf16.vlgmr.msra.gmra.mrb[8].mxu0 %vm151_vm3, %v364_v30 }
 0x930   :  { %753 = vmatpush3.bf16.msra.mxu0 %v1021_v18  ;;  %756 = vmatprep.mubr.msk.bf16.mxu0 %vm927_vm0, %v926_v0 }
 0x931   :  { %754 = vmatprep.subr.bf16.mxu0 %v926_v0 }
 0x934   :  { %755 = vmatpush3.bf16.msra.mxu0 %v1024_v20 }
 0xa02   :  { %v402_v31 = vpop.f32.mrb[8].mxu0 }
 0xa03   :  { %v409_v33 = vadd.f32 %v408_v32, %v402_v31  ;;  %v742_v34 = vpop.f32.mrb[9].mxu0 }
 0xa04   :  { %v405_v35 = vpop.f32.mrb[10].mxu0 }
 0xa05   :  { %v676_v36 = vmul.f32 -1.442695, %v409_v33  ;;  %v743_v37 = vpop.f32.mrb[11].mxu0 }
 0xa07   :  { %803 = vpow2.f32 %v676_v36 }
 0xa11   :  { %v804_v38 = vpop.eup %803 }
 0xa12   :  { %v413_v39 = vadd.f32 1.0, %v804_v38 }
 0xa14   :  { %805 = vrcp.f32 %v413_v39 }
 0xa1e   :  { %v806_v40 = vpop.eup %805 }
 0xa1f   :  { %417 = vrot.lane.b32.xlu1 %v806_v40, %s930_s29 }
 0xa91   :  { %v418_v41 = vpop.permute.xlu1 %417 }
 0xa92   :  { %v420_v42 = vmul.f32 %v418_v41, %v402_v31 }
 0xa94   :  { %v421_v43 = vadd.f32 %v420_v42, %v408_v32 }
 0xa96   :  { %807 = vtanh.f32 %v421_v43 }
 0xaa0   :  { %v808_v44 = vpop.eup %807 }
 0xaa1   :  { %v423_v45 = vsub.f32 %v362_v29, %v808_v44  ;;  %v621_v29 = vld [vmem:[#allocation2 + $0xe] sm:$0x3] }
 0xaa3   :  { %425 = vrot.lane.b32.xlu0 %v423_v45, %s928_s3 }
 0xb15   :  { %v426_v46 = vpop.permute.xlu0 %425 }
 0xb16   :  { %v428_v47 = vmul.f32 %v806_v40, %v426_v46 }
 0xb18   :  { %430 = vrot.lane.b32.xlu1 %v428_v47, %s929_s26 }
 0xb8a   :  { %v431_v48 = vpop.permute.xlu1 %430 }
 0xb8b   :  { %v433_v49 = vadd.f32 %v808_v44, %v431_v48 }
 0xb8d   :  { %434 = vst.msk [vmem:[#allocation9 + $0x8] sm:$0x3] %vm145_vm4, %v433_v49  ;;  %v435_v50 = vpack.c.bf16 %v433_v49, %v433_v49 }
 0xb8f   :  { %749 = vmatmul.mubr.msk.bf16.vlgmr.msra.gmra.mrb[8].mxu1 %vm151_vm3, %v435_v50 }
 0xb90   :  { %761 = vmatpush3.bf16.msra.mxu1 %v1021_v18  ;;  %764 = vmatprep.mubr.msk.bf16.mxu1 %vm927_vm0, %v926_v0 }
 0xb91   :  { %762 = vmatprep.subr.bf16.mxu1 %v926_v0 }
 0xb94   :  { %763 = vmatpush3.bf16.msra.mxu1 %v1024_v20 }
 0xc62   :  { %v473_v51 = vpop.f32.mrb[8].mxu1 }
 0xc63   :  { %v480_v53 = vadd.f32 %v479_v52, %v473_v51  ;;  %v750_v54 = vpop.f32.mrb[9].mxu1 }
 0xc64   :  { %v476_v55 = vpop.f32.mrb[10].mxu1 }
 0xc65   :  { %v678_v56 = vmul.f32 -1.442695, %v480_v53  ;;  %v751_v57 = vpop.f32.mrb[11].mxu1 }
 0xc67   :  { %809 = vpow2.f32 %v678_v56 }
 0xc71   :  { %v810_v58 = vpop.eup %809 }
 0xc72   :  { %v484_v59 = vadd.f32 1.0, %v810_v58 }
 0xc74   :  { %811 = vrcp.f32 %v484_v59 }
 0xc7e   :  { %v812_v60 = vpop.eup %811 }
 0xc7f   :  { %488 = vrot.lane.b32.xlu0 %v812_v60, %s930_s29 }
 0xcf1   :  { %v489_v18 = vpop.permute.xlu0 %488 }
 0xcf2   :  { %v491_v61 = vmul.f32 %v489_v18, %v473_v51 }
 0xcf4   :  { %v492_v62 = vadd.f32 %v491_v61, %v479_v52 }
 0xcf6   :  { %813 = vtanh.f32 %v492_v62 }
 0xd00   :  { %v814_v0 = vpop.eup %813 }
 0xd01   :  { %v494_v20 = vsub.f32 %v433_v49, %v814_v0 }
 0xd03   :  { %496 = vrot.lane.b32.xlu1 %v494_v20, %s928_s3 }
 0xd75   :  { %v497_v63 = vpop.permute.xlu1 %496 }
 0xd76   :  { %v499_v1 = vmul.f32 %v812_v60, %v497_v63 }
 0xd78   :  { %501 = vrot.lane.b32.xlu0 %v499_v1, %s929_s26 }
 0xdea   :  { %v502_v2 = vpop.permute.xlu0 %501 }
 0xdeb   :  { %v504_v3 = vadd.f32 %v814_v0, %v502_v2 }
 0xded   :  { %505 = vst.msk [vmem:[#allocation9 + $0xa] sm:$0x3] %vm145_vm4, %v504_v3  ;;  %v506_v4 = vpack.c.bf16 %v504_v3, %v504_v3 }
 0xdef   :  { %757 = vmatmul.mubr.msk.bf16.vlgmr.msra.gmra.mrb[12].mxu0 %vm151_vm3, %v506_v4 }
 0xec2   :  { %v544_v5 = vpop.f32.mrb[12].mxu0 }
 0xec3   :  { %v551_v7 = vadd.f32 %v550_v6, %v544_v5  ;;  %v758_v8 = vpop.f32.mrb[13].mxu0 }
 0xec4   :  { %v547_v9 = vpop.f32.mrb[14].mxu0 }
 0xec5   :  { %v680_v10 = vmul.f32 -1.442695, %v551_v7  ;;  %v759_v11 = vpop.f32.mrb[15].mxu0 }
 0xec7   :  { %815 = vpow2.f32 %v680_v10 }
 0xed1   :  { %v816_v12 = vpop.eup %815 }
 0xed2   :  { %v555_v13 = vadd.f32 1.0, %v816_v12 }
 0xed4   :  { %817 = vrcp.f32 %v555_v13 }
 0xede   :  { %v818_v14 = vpop.eup %817 }
 0xedf   :  { %559 = vrot.lane.b32.xlu1 %v818_v14, %s930_s29 }
 0xf51   :  { %v560_v15 = vpop.permute.xlu1 %559 }
 0xf52   :  { %v562_v16 = vmul.f32 %v560_v15, %v544_v5 }
 0xf54   :  { %v563_v17 = vadd.f32 %v562_v16, %v550_v6 }
 0xf56   :  { %819 = vtanh.f32 %v563_v17 }
 0xf60   :  { %v820_v19 = vpop.eup %819 }
 0xf61   :  { %v565_v21 = vsub.f32 %v504_v3, %v820_v19 }
 0xf63   :  { %567 = vrot.lane.b32.xlu0 %v565_v21, %s928_s3 }
 0xfd5   :  { %v568_v22 = vpop.permute.xlu0 %567 }
 0xfd6   :  { %v570_v23 = vmul.f32 %v818_v14, %v568_v22 }
 0xfd8   :  { %572 = vrot.lane.b32.xlu1 %v570_v23, %s929_s26 }
0x104a   :  { %v573_v24 = vpop.permute.xlu1 %572 }
0x104b   :  { %v575_v25 = vadd.f32 %v820_v19, %v573_v24 }
0x104d   :  { %576 = vst.msk [vmem:[#allocation9 + $0xc] sm:$0x3] %vm145_vm4, %v575_v25  ;;  %v577_v26 = vpack.c.bf16 %v575_v25, %v575_v25 }
0x104f   :  { %765 = vmatmul.mubr.msk.bf16.vlgmr.msra.gmra.mrb[12].mxu1 %vm151_vm3, %v577_v26 }
0x1122   :  { %v615_v27 = vpop.f32.mrb[12].mxu1 }
0x1123   :  { %v622_v30 = vadd.f32 %v621_v29, %v615_v27  ;;  %v766_v31 = vpop.f32.mrb[13].mxu1 }
0x1124   :  { %v618_v32 = vpop.f32.mrb[14].mxu1 }
0x1125   :  { %v682_v33 = vmul.f32 -1.442695, %v622_v30  ;;  %v767_v34 = vpop.f32.mrb[15].mxu1 }
0x1127   :  { %821 = vpow2.f32 %v682_v33 }
0x1131   :  { %v822_v35 = vpop.eup %821 }
0x1132   :  { %v626_v36 = vadd.f32 1.0, %v822_v35 }
0x1134   :  { %823 = vrcp.f32 %v626_v36 }
0x113e   :  { %v824_v37 = vpop.eup %823 }
0x113f   :  { %630 = vrot.lane.b32.xlu0 %v824_v37, %s930_s29 }
0x11b1   :  { %v631_v38 = vpop.permute.xlu0 %630 }
0x11b2   :  { %v633_v39 = vmul.f32 %v631_v38, %v615_v27 }
0x11b4   :  { %v634_v40 = vadd.f32 %v633_v39, %v621_v29 }
0x11b6   :  { %825 = vtanh.f32 %v634_v40 }
0x11c0   :  { %v826_v41 = vpop.eup %825 }
0x11c1   :  { %v636_v42 = vsub.f32 %v575_v25, %v826_v41 }
0x11c3   :  { %638 = vrot.lane.b32.xlu1 %v636_v42, %s928_s3 }
0x11c7   :  { %142 = vrot.lane.b32.xlu1 %v1034_v28, %s929_s26 }
0x1235   :  { %v639_v43 = vpop.permute.xlu1 %638 }
0x1236   :  { %v641_v44 = vmul.f32 %v824_v37, %v639_v43 }
0x1238   :  { %643 = vrot.lane.b32.xlu0 %v641_v44, %s929_s26 }
0x1239   :  { %v143_v45 = vpop.permute.xlu1 %142 }
0x123a   :  { %146 = vst.msk [vmem:[#allocation9] sm:$0x3] %vm145_vm4, %v143_v45 }
0x12aa   :  { %v644_v46 = vpop.permute.xlu0 %643 }
0x12ab   :  { %v646_v47 = vadd.f32 %v826_v41, %v644_v46 }
0x12ad   :  { %647 = vst.msk [vmem:[#allocation9 + $0xe] sm:$0x3] %vm145_vm4, %v646_v47 }
0x12ae   :  { %904 = shalt.err (!%p901_p0)
}
0x12af   :  { %s905_s9 = scalar_lea.hbm %s1125_s4, 256 }
0x12b0   :  { %p906_p1 = scmp.ne.s32.totalorder %s1125_s4, %s905_s9  ;;  %p909_p2 = scmp.lt.u32.totalorder %s905_s9, %s1125_s4 }
0x12b2   :  { %p911_p3 = pnand %p909_p2, %p906_p1 }
0x12b4   :  { %914 = shalt.err (!%p911_p3)
}
0x12b5   :  { %659 = dma.vmem_to_hbm [thread:$0]  %s654_s5, 256, %s1125_s4, [#allocation5], %s923_s27, %s923_s27, %s924_s28  }
0x12b6   :  { %919 = dma.done.wait [#allocation5], 256  }
0x12b7   :  { %920 = vsyncadd [#allocation5], 4294967040 }
0x12b8   :  { %663 = vsyncpa [#allocation4], 1 }
0x12b9   :  { %664 = vsyncpa [#allocation7], 1 }
0x12ba   :  { %665 = vsyncpa [#allocation5], 1 }

</bundles_post_ra>
